<compile_context>
chip_gen: v7x
topology: tpu7x:2x2x1
jax: 0.10.0
libtpu: 0.0.40
codegen_flags: <defaults>
</compile_context>

<pallas_src>
import jax
import jax.numpy as jnp
from jax.experimental import pallas as pl
from jax.experimental.pallas import tpu as pltpu

BN_EPS = 1e-5


def score_network_kernel(x_ref,      # VMEM (B, C, HW)  contiguous view of NCHW
                         cw_ref,     # SMEM (C,)        conv 1x1 weight
                         gamma_ref,  # SMEM (1,)        BN weight
                         beta_ref,   # SMEM (1,)        BN bias
                         w1_ref,     # VMEM (HW, Hid)   fc1 weight (transposed)
                         b1_ref,     # VMEM (1, Hid)    fc1 bias
                         w2_ref,     # VMEM (1, Hid)    fc2 weight (lane-dense row)
                         b2_ref,     # SMEM (1,)        fc2 bias
                         o_ref):     # VMEM (B, 1)
    B, C, HW = x_ref.shape

    # --- 1x1 conv over channels: acc[b, p] = sum_c w[c] * x[b, c, p] ---------
    # Conv bias intentionally omitted: it cancels exactly under train-mode BN.
    acc = x_ref[:, 0, :] * cw_ref[0]
    for c in range(1, C):                       # C is tiny & static -> unrolled
        acc = acc + x_ref[:, c, :] * cw_ref[c]  # (B, HW) float32

    # --- BatchNorm2d (training mode, biased var over N*H*W): one-pass stats --
    n = float(B * HW)
    s1 = jnp.sum(acc)
    s2 = jnp.sum(acc * acc)
    mean = s1 / n
    var = s2 / n - mean * mean
    scale = gamma_ref[0] * jax.lax.rsqrt(var + BN_EPS)
    shift = beta_ref[0] - mean * scale

    # --- fused affine normalize + ReLU (single (B, HW) pass) -----------------
    h = jnp.maximum(acc * scale + shift, 0.0)

    # --- fc1 + ReLU : (B, HW) @ (HW, Hid) on the MXU --------------------------
    h1 = jnp.dot(h, w1_ref[...], preferred_element_type=jnp.float32) + b1_ref[...]
    h1 = jnp.maximum(h1, 0.0)                   # (B, Hid)

    # --- fc2 : tiny Hid->1 contraction on the VPU (mul + lane reduce) --------
    out = jnp.sum(h1 * w2_ref[...], axis=-1, keepdims=True) + b2_ref[0]
    o_ref[...] = out


def _score_network_forward(x_nchw, params):
    """x_nchw: (B, C, H, W) float32.  Returns (B, 1) float32."""
    B, C, H, W = x_nchw.shape
    HW = H * W

    # Free, contiguous view of NCHW (no transpose, no extra HBM round-trip).
    x_k = x_nchw.reshape(B, C, HW)
    # fc2 weight (Hid, 1) -> lane-dense (1, Hid) row (row-major reshape, free).
    w2_row = params["fc2_w"].reshape(1, -1)

    vmem = pl.BlockSpec(memory_space=pltpu.MemorySpace.VMEM)
    smem = pl.BlockSpec(memory_space=pltpu.MemorySpace.SMEM)

    return pl.pallas_call(
        score_network_kernel,
        out_shape=jax.ShapeDtypeStruct((B, 1), jnp.float32),
        in_specs=[vmem,   # x
                  smem,   # conv_w
                  smem,   # bn gamma
                  smem,   # bn beta
                  vmem,   # fc1_w
                  vmem,   # fc1_b
                  vmem,   # fc2_w (row)
                  smem],  # fc2_b
        out_specs=vmem,
    )(x_k,
      params["conv_w"],
      params["bn_gamma"], params["bn_beta"],
      params["fc1_w"], params["fc1_b"],
      w2_row, params["fc2_b"])


# Single jitted dispatch: reshape + pallas_call fuse into one program.
score_network_forward = jax.jit(_score_network_forward)


def ref_forward(x_nchw, params):
    """Pure-JAX reference mirroring the PyTorch forward (train-mode BN)."""
    B = x_nchw.shape[0]
    conv = jnp.einsum("bchw,c->bhw", x_nchw, params["conv_w"]) + params["conv_b"][0]
    mean = conv.mean()
    var = ((conv - mean) ** 2).mean()
    h = (conv - mean) / jnp.sqrt(var + BN_EPS) * params["bn_gamma"][0] + params["bn_beta"][0]
    h = jnp.maximum(h, 0.0)
    h = h.reshape(B, -1)
    h1 = jnp.maximum(h @ params["fc1_w"] + params["fc1_b"][0], 0.0)
    return h1 @ params["fc2_w"] + params["fc2_b"][0]


def init_params(key, num_channels, channel_height, channel_width, num_value_hidden_channels):
    HW = channel_height * channel_width
    ks = jax.random.split(key, 8)
    f32 = jnp.float32
    return {
        # Conv2d(num_channels, 1, kernel_size=1): weight (1, C, 1, 1) -> stored as (C,)
        "conv_w": (jax.random.normal(ks[0], (num_channels,), f32) * 0.1),
        "conv_b": (jax.random.normal(ks[1], (1,), f32) * 0.1),
        # BatchNorm2d(1) affine params
        "bn_gamma": jnp.ones((1,), f32),
        "bn_beta": jnp.zeros((1,), f32),
        # Linear(HW, hidden): PyTorch weight is (hidden, HW); store transposed (HW, hidden)
        "fc1_w": (jax.random.normal(ks[2], (HW, num_value_hidden_channels), f32) * 0.05),
        "fc1_b": (jax.random.normal(ks[3], (1, num_value_hidden_channels), f32) * 0.05),
        # Linear(hidden, 1): stored transposed (hidden, 1)
        "fc2_w": (jax.random.normal(ks[4], (num_value_hidden_channels, 1), f32) * 0.05),
        "fc2_b": (jax.random.normal(ks[5], (1,), f32) * 0.05),
    }


if __name__ == "__main__":
    B, C, H, W, HID = 2, 4, 16, 16, 32

    key = jax.random.PRNGKey(0)
    k_x, k_p = jax.random.split(key)
    x = jax.random.normal(k_x, (B, C, H, W), jnp.float32)
    params = init_params(k_p, C, H, W, HID)

    out = jax.block_until_ready(score_network_forward(x, params))
    ref = jax.block_until_ready(ref_forward(x, params))

    assert out.shape == (B, 1), out.shape
    assert jnp.allclose(out, ref, atol=1e-4, rtol=1e-4), (out, ref)
    print("KERNEL_OK")
</pallas_src>

<mosaic_0001>
module attributes {stable_mosaic.version = 11 : i64} {
  func.func @score_network_kernel(%arg0: memref<2x4x256xf32, #tpu.memory_space<vmem>>, %arg1: memref<4xf32, #tpu.memory_space<smem>>, %arg2: memref<1xf32, #tpu.memory_space<smem>>, %arg3: memref<1xf32, #tpu.memory_space<smem>>, %arg4: memref<256x32xf32, #tpu.memory_space<vmem>>, %arg5: memref<1x32xf32, #tpu.memory_space<vmem>>, %arg6: memref<1x32xf32, #tpu.memory_space<vmem>>, %arg7: memref<1xf32, #tpu.memory_space<smem>>, %arg8: memref<2x1xf32, #tpu.memory_space<vmem>>) attributes {dimension_semantics = [], scalar_prefetch = 0 : i64, scratch_operands = 0 : i64, tpu.core_type = #tpu.core_type<tc>} {
    %c0 = arith.constant 0 : index
    %c0_0 = arith.constant 0 : index
    %c0_1 = arith.constant 0 : index
    %0 = vector.load %arg0[%c0, %c0_0, %c0_1] : memref<2x4x256xf32, #tpu.memory_space<vmem>>, vector<2x1x256xf32>
    %1 = vector.shape_cast %0 : vector<2x1x256xf32> to vector<2x256xf32>
    %c0_2 = arith.constant 0 : index
    %2 = memref.load %arg1[%c0_2] : memref<4xf32, #tpu.memory_space<smem>>
    %3 = vector.broadcast %2 : f32 to vector<2x256xf32>
    %4 = arith.mulf %1, %3 : vector<2x256xf32>
    %c0_3 = arith.constant 0 : index
    %c1 = arith.constant 1 : index
    %c0_4 = arith.constant 0 : index
    %5 = vector.load %arg0[%c0_3, %c1, %c0_4] : memref<2x4x256xf32, #tpu.memory_space<vmem>>, vector<2x1x256xf32>
    %6 = vector.shape_cast %5 : vector<2x1x256xf32> to vector<2x256xf32>
    %c1_5 = arith.constant 1 : index
    %7 = memref.load %arg1[%c1_5] : memref<4xf32, #tpu.memory_space<smem>>
    %8 = vector.broadcast %7 : f32 to vector<2x256xf32>
    %9 = arith.mulf %6, %8 : vector<2x256xf32>
    %10 = arith.addf %4, %9 : vector<2x256xf32>
    %c0_6 = arith.constant 0 : index
    %c2 = arith.constant 2 : index
    %c0_7 = arith.constant 0 : index
    %11 = vector.load %arg0[%c0_6, %c2, %c0_7] : memref<2x4x256xf32, #tpu.memory_space<vmem>>, vector<2x1x256xf32>
    %12 = vector.shape_cast %11 : vector<2x1x256xf32> to vector<2x256xf32>
    %c2_8 = arith.constant 2 : index
    %13 = memref.load %arg1[%c2_8] : memref<4xf32, #tpu.memory_space<smem>>
    %14 = vector.broadcast %13 : f32 to vector<2x256xf32>
    %15 = arith.mulf %12, %14 : vector<2x256xf32>
    %16 = arith.addf %10, %15 : vector<2x256xf32>
    %c0_9 = arith.constant 0 : index
    %c3 = arith.constant 3 : index
    %c0_10 = arith.constant 0 : index
    %17 = vector.load %arg0[%c0_9, %c3, %c0_10] : memref<2x4x256xf32, #tpu.memory_space<vmem>>, vector<2x1x256xf32>
    %18 = vector.shape_cast %17 : vector<2x1x256xf32> to vector<2x256xf32>
    %c3_11 = arith.constant 3 : index
    %19 = memref.load %arg1[%c3_11] : memref<4xf32, #tpu.memory_space<smem>>
    %20 = vector.broadcast %19 : f32 to vector<2x256xf32>
    %21 = arith.mulf %18, %20 : vector<2x256xf32>
    %22 = arith.addf %16, %21 : vector<2x256xf32>
    %23 = vector.shape_cast %22 : vector<2x256xf32> to vector<1x2x256xf32>
    %cst = arith.constant dense<0.000000e+00> : vector<1xf32>
    %24 = vector.multi_reduction <add>, %23, %cst [1, 2] : vector<1x2x256xf32> to vector<1xf32>
    %25 = vector.shape_cast %24 : vector<1xf32> to vector<1x1x1xf32>
    %26 = vector.extract %25[0, 0, 0] : f32 from vector<1x1x1xf32>
    %27 = arith.mulf %22, %22 : vector<2x256xf32>
    %28 = vector.shape_cast %27 : vector<2x256xf32> to vector<1x2x256xf32>
    %cst_12 = arith.constant dense<0.000000e+00> : vector<1xf32>
    %29 = vector.multi_reduction <add>, %28, %cst_12 [1, 2] : vector<1x2x256xf32> to vector<1xf32>
    %30 = vector.shape_cast %29 : vector<1xf32> to vector<1x1x1xf32>
    %31 = vector.extract %30[0, 0, 0] : f32 from vector<1x1x1xf32>
    %cst_13 = arith.constant 5.120000e+02 : f32
    %32 = arith.divf %26, %cst_13 : f32
    %cst_14 = arith.constant 5.120000e+02 : f32
    %33 = arith.divf %31, %cst_14 : f32
    %34 = arith.mulf %32, %32 : f32
    %35 = arith.subf %33, %34 : f32
    %c0_15 = arith.constant 0 : index
    %36 = memref.load %arg2[%c0_15] : memref<1xf32, #tpu.memory_space<smem>>
    %cst_16 = arith.constant 9.99999974E-6 : f32
    %37 = arith.addf %35, %cst_16 : f32
    %38 = math.rsqrt %37 : f32
    %39 = arith.mulf %36, %38 : f32
    %c0_17 = arith.constant 0 : index
    %40 = memref.load %arg3[%c0_17] : memref<1xf32, #tpu.memory_space<smem>>
    %41 = arith.mulf %32, %39 : f32
    %42 = arith.subf %40, %41 : f32
    %43 = vector.broadcast %39 : f32 to vector<2x256xf32>
    %44 = arith.mulf %22, %43 : vector<2x256xf32>
    %45 = vector.broadcast %42 : f32 to vector<2x256xf32>
    %46 = arith.addf %44, %45 : vector<2x256xf32>
    %cst_18 = arith.constant 0.000000e+00 : f32
    %47 = vector.broadcast %cst_18 : f32 to vector<2x256xf32>
    %48 = arith.maximumf %46, %47 : vector<2x256xf32>
    %c0_19 = arith.constant 0 : index
    %c0_20 = arith.constant 0 : index
    %49 = vector.load %arg4[%c0_19, %c0_20] : memref<256x32xf32, #tpu.memory_space<vmem>>, vector<256x32xf32>
    %cst_21 = arith.constant dense<0.000000e+00> : vector<2x32xf32>
    %50 = tpu.matmul %48, %49, %cst_21 {dimension_numbers = #tpu.dot_dimension_numbers<[1], [0], [0], [1], [0, 0, 1, 1], [], []>} : vector<2x256xf32>, vector<256x32xf32>, vector<2x32xf32> -> vector<2x32xf32>
    %c0_22 = arith.constant 0 : index
    %c0_23 = arith.constant 0 : index
    %51 = vector.load %arg5[%c0_22, %c0_23] : memref<1x32xf32, #tpu.memory_space<vmem>>, vector<1x32xf32>
    %52 = vector.broadcast %51 : vector<1x32xf32> to vector<2x32xf32>
    %53 = arith.addf %50, %52 : vector<2x32xf32>
    %cst_24 = arith.constant 0.000000e+00 : f32
    %54 = vector.broadcast %cst_24 : f32 to vector<2x32xf32>
    %55 = arith.maximumf %53, %54 : vector<2x32xf32>
    %c0_25 = arith.constant 0 : index
    %c0_26 = arith.constant 0 : index
    %56 = vector.load %arg6[%c0_25, %c0_26] : memref<1x32xf32, #tpu.memory_space<vmem>>, vector<1x32xf32>
    %57 = vector.broadcast %56 : vector<1x32xf32> to vector<2x32xf32>
    %58 = arith.mulf %55, %57 : vector<2x32xf32>
    %cst_27 = arith.constant dense<0.000000e+00> : vector<2xf32>
    %59 = vector.multi_reduction <add>, %58, %cst_27 [1] : vector<2x32xf32> to vector<2xf32>
    %60 = vector.shape_cast %59 : vector<2xf32> to vector<2x1xf32>
    %c0_28 = arith.constant 0 : index
    %61 = memref.load %arg7[%c0_28] : memref<1xf32, #tpu.memory_space<smem>>
    %62 = vector.broadcast %61 : f32 to vector<2x1xf32>
    %63 = arith.addf %60, %62 : vector<2x1xf32>
    %c0_29 = arith.constant 0 : index
    %c0_30 = arith.constant 0 : index
    %64 = vector.load %arg8[%c0_29, %c0_30] : memref<2x1xf32, #tpu.memory_space<vmem>>, vector<2x1xf32>
    tpu.vector_store %arg8[%c0_29, %c0_30], %63 {strides = array<i32>} : memref<2x1xf32, #tpu.memory_space<vmem>>, vector<2x1xf32>,
    return
  }
}

</mosaic_0001>

<bundles_post_ra>
// kernel: _score_network_forward.1
= control target key start
LH: loop header
LB: loop body
LE: loop exit
PB: predicated region body
PF: predicated region fallthrough
CT: control target
= control target key end

     0   :  { %16 = vsyncpa [#allocation6], 0  ;;  %s661_s0 = inlined_call_operand.vmem [shape: f32[2,4,256], index: 0, kind: input, shape index: {}]   ;;  %s662_s1 = inlined_call_operand.vmem [shape: f32[4], index: 1, kind: input, shape index: {}]   ;;  %s663_s2 = inlined_call_operand.<no memory space> [shape: f32[1], index: 2, kind: input, shape index: {}]   ;;  %s664_s3 = inlined_call_operand.<no memory space> [shape: f32[1], index: 3, kind: input, shape index: {}]   ;;  %s665_s4 = inlined_call_operand.vmem [shape: f32[256,32], index: 4, kind: input, shape index: {}]   ;;  %s666_s5 = inlined_call_operand.vmem [shape: f32[1,32], index: 5, kind: input, shape index: {}]   ;;  %s667_s6 = inlined_call_operand.vmem [shape: f32[1,32], index: 6, kind: input, shape index: {}]   ;;  %s668_s7 = inlined_call_operand.<no memory space> [shape: f32[1], index: 7, kind: input, shape index: {}]   ;;  %s669_s8 = inlined_call_operand.vmem [shape: f32[2,1], index: 8, kind: output, shape index: {}]  }
   0x1   :  { %s25_s29 = sshll.u32 %s662_s1, 4  ;;  %s26_s29 = int_to_ptr.vmem [resolvable:$true] %s25_s29 }
   0x2   :  { %s436_s30 = scalar_lea.vmem %s26_s29, 16  ;;  %p441_p1 = scmp.lt.s32.totalorder %s26_s29, %s26_s29 }
   0x3   :  { %p437_p0 = scmp.ne.s32.totalorder %s26_s29, %s436_s30  ;;  %p442_p2 = scmp.lt.s32.totalorder %s436_s30, %s436_s30 }
   0x5   :  { %p443_p3 = por %p442_p2, %p441_p1 }
   0x7   :  { %p444_p4 = pnand %p443_p3, %p437_p0 }
   0x9   :  { %447 = shalt.err (!%p444_p4)
}
   0xa   :  { %s450_s9 = smov [#allocation5]  }
   0xb   :  { %28 = dma.vmem_to_smem %s26_s29, 16, %s450_s9, [#allocation6]  }
   0xc   :  { %448 = dma.done.wait [#allocation6], 16  }
   0xd   :  { %449 = vsyncadd [#allocation6], 4294967280 }
   0xe   :  { %44 = sfence }
   0xf   :  { %s48_s10 = sld [smem:[#allocation5]]  ;;  %s350_s11 = sld [smem:[#allocation5 + $0x1]]  ;;  %v45_v0 = vld [vmem:[%s661_s0] ss:$4 sm:$0x3]  ;;  %v88_v3 = vlaneseq  ;;  %vm109_vm0 = vcmask 1041408  }
  0x10   :  { %v347_v1 = vld [vmem:[%s661_s0 + $0x8] ss:$4 sm:$0x3]  ;;  %s353_s15 = sld [smem:[#allocation5 + $0x2]]  ;;  %s356_s18 = sld [smem:[#allocation5 + $0x3]]  ;;  %v204_v50 = vld [vmem:[%s665_s4 + $0x80] sm:$0xff] }
  0x11   :  { %v348_v2 = vld [vmem:[%s661_s0 + $0x1] ss:$4 sm:$0x3]  ;;  %v349_v4 = vld [vmem:[%s661_s0 + $0x9] ss:$4 sm:$0x3] }
  0x12   :  { %v451_v6 = vmov 1966171168   ;;  %v351_v11 = vld [vmem:[%s661_s0 + $0x2] ss:$4 sm:$0x3]  ;;  %v89_v15 = vshrl.u32 %v88_v3, 7 }
  0x13   :  { %v86_v7 = vunpack.c.l.s4 %v451_v6  ;;  %v352_v12 = vld [vmem:[%s661_s0 + $0xa] ss:$4 sm:$0x3]  ;;  %v354_v17 = vld [vmem:[%s661_s0 + $0x3] ss:$4 sm:$0x3] }
  0x14   :  { %v355_v18 = vld [vmem:[%s661_s0 + $0xb] ss:$4 sm:$0x3]  ;;  %v188_v52 = vld [vmem:[%s665_s4] sm:$0xff]  ;;  %v206_v55 = vld [vmem:[%s665_s4 + $0x90] sm:$0xff]  ;;  %vm333_vm1 = vcmask 254976  }
  0x15   :  { %v49_v5 = vstv %s48_s10  ;;  %v57_v10 = vstv %s350_s11  ;;  %v87_v19 = vunpack.c.0.s8 %v86_v7  ;;  %v205_v51 = vld [vmem:[%s665_s4 + $0x88] sm:$0xff]  ;;  %v207_v56 = vld [vmem:[%s665_s4 + $0x98] sm:$0xff]  ;;  %vm340_vm2 = vcmask 1024  }
  0x16   :  { %v50_v8 = vmul.f32 %v49_v5, %v45_v0  ;;  %v51_v9 = vmul.f32 %v347_v1, %v49_v5  ;;  %v58_v13 = vmul.f32 %v348_v2, %v57_v10  ;;  %v59_v14 = vmul.f32 %v349_v4, %v57_v10  ;;  %v189_v54 = vld [vmem:[%s665_s4 + $0x8] sm:$0xff]  ;;  %v190_v59 = vld [vmem:[%s665_s4 + $0x10] sm:$0xff]  ;;  %v191_v60 = vld [vmem:[%s665_s4 + $0x18] sm:$0xff] }
  0x17   :  { %v67_v16 = vstv %s353_s15  ;;  %v77_v24 = vstv %s356_s18  ;;  %v528_v31 = vsub.s32 %v87_v19, %v89_v15  ;;  %v394_v53 = vpack.c.bf16 %v205_v51, %v204_v50  ;;  %v208_v61 = vld [vmem:[%s665_s4 + $0xa0] sm:$0xff]  ;;  %v209_v62 = vld [vmem:[%s665_s4 + $0xa8] sm:$0xff] }
  0x18   :  { %v60_v20 = vadd.f32 %v58_v13, %v50_v8  ;;  %v61_v21 = vadd.f32 %v59_v14, %v51_v9  ;;  %v68_v22 = vmul.f32 %v351_v11, %v67_v16  ;;  %v69_v23 = vmul.f32 %v352_v12, %v67_v16  ;;  %v192_v1 = vld [vmem:[%s665_s4 + $0x20] sm:$0xff]  ;;  %v193_v2 = vld [vmem:[%s665_s4 + $0x28] sm:$0xff]  ;;  %v210_v8 = vld [vmem:[%s665_s4 + $0xb0] sm:$0xff] }
  0x19   :  { %v78_v27 = vmul.f32 %v354_v17, %v77_v24  ;;  %v79_v28 = vmul.f32 %v355_v18, %v77_v24  ;;  %v396_v57 = vpack.c.bf16 %v189_v54, %v188_v52  ;;  %v398_v58 = vpack.c.bf16 %v207_v56, %v206_v55  ;;  %395 = vmatprep.subr.bf16.mxu0 %v394_v53  ;;  %v211_v9 = vld [vmem:[%s665_s4 + $0xb8] sm:$0xff]  ;;  %v194_v13 = vld [vmem:[%s665_s4 + $0x30] sm:$0xff]  ;;  %v212_v18 = vld [vmem:[%s665_s4 + $0xc0] sm:$0xff] }
  0x1a   :  { %v70_v25 = vadd.f32 %v68_v22, %v60_v20  ;;  %v71_v26 = vadd.f32 %v69_v23, %v61_v21  ;;  %v400_v63 = vpack.c.bf16 %v191_v60, %v190_v59  ;;  %v402_v0 = vpack.c.bf16 %v209_v62, %v208_v61  ;;  %v195_v14 = vld [vmem:[%s665_s4 + $0x38] sm:$0xff]  ;;  %v213_v19 = vld [vmem:[%s665_s4 + $0xc8] sm:$0xff]  ;;  %v196_v23 = vld [vmem:[%s665_s4 + $0x40] sm:$0xff] }
  0x1b   :  { %397 = vmatpush3.bf16.msra.mxu0 %v396_v57  ;;  %v404_v3 = vpack.c.bf16 %v193_v2, %v192_v1  ;;  %v406_v12 = vpack.c.bf16 %v211_v9, %v210_v8  ;;  %v408_v15 = vpack.c.bf16 %v195_v14, %v194_v13  ;;  %v410_v22 = vpack.c.bf16 %v213_v19, %v212_v18  ;;  %v197_v24 = vld [vmem:[%s665_s4 + $0x48] sm:$0xff] }
  0x1c   :  { %v524_v29 = vadd.f32 %v78_v27, %v70_v25  ;;  %v526_v30 = vadd.f32 %v79_v28, %v71_v26  ;;  %399 = vmatprep.subr.bf16.mxu0 %v398_v58  ;;  %v412_v25 = vpack.c.bf16 %v197_v24, %v196_v23  ;;  %v214_v28 = vld [vmem:[%s665_s4 + $0xd0] sm:$0xff] }
  0x1e   :  { %v84_v32 = vcombine.low %v524_v29, %v526_v30  ;;  %v122_v33 = vmul.f32 %v524_v29, %v524_v29  ;;  %v123_v34 = vmul.f32 %v526_v30, %v526_v30 }
  0x1f   :  { %401 = vmatpush3.bf16.msra.mxu0 %v400_v63 }
  0x20   :  { %v91_v35 = vrot.slane %v84_v32, %v528_v31  ;;  %v126_v36 = vcombine.low %v122_v33, %v123_v34  ;;  %403 = vmatprep.subr.bf16.mxu0 %v402_v0  ;;  %v215_v32 = vld [vmem:[%s665_s4 + $0xd8] sm:$0xff] }
  0x21   :  { %v414_v34 = vpack.c.bf16 %v215_v32, %v214_v28 }
  0x22   :  { %v92_v37 = vcombine.high %v91_v35, %v91_v35  ;;  %v99_v38 = vrot.slane %v91_v35, %v528_v31  ;;  %v133_v39 = vrot.slane %v126_v36, %v528_v31  ;;  %v198_v35 = vld [vmem:[%s665_s4 + $0x50] sm:$0xff]  ;;  %v199_v36 = vld [vmem:[%s665_s4 + $0x58] sm:$0xff] }
  0x23   :  { %405 = vmatpush3.bf16.msra.mxu0 %v404_v3 }
  0x24   :  { %v106_v40 = vrot.slane %v92_v37, %v528_v31  ;;  %v110_v41 = vsel %vm109_vm0, %v99_v38, 0.0  ;;  %v134_v42 = vcombine.high %v133_v39, %v133_v39  ;;  %v141_v43 = vrot.slane %v133_v39, %v528_v31  ;;  %407 = vmatprep.subr.bf16.mxu0 %v406_v12  ;;  %v216_v39 = vld [vmem:[%s665_s4 + $0xe0] sm:$0xff] }
  0x25   :  { %v416_v37 = vpack.c.bf16 %v199_v36, %v198_v35 }
  0x26   :  { %v111_v44 = vsel %vm109_vm0, %v106_v40, 0.0  ;;  %v148_v45 = vrot.slane %v134_v42, %v528_v31  ;;  %v151_v46 = vsel %vm109_vm0, %v141_v43, 0.0  ;;  %v217_v40 = vld [vmem:[%s665_s4 + $0xe8] sm:$0xff] }
  0x27   :  { %v112_v47 = vadd.f32 %v111_v44, %v110_v41  ;;  %409 = vmatpush3.bf16.msra.mxu0 %v408_v15  ;;  %v200_v41 = vld [vmem:[%s665_s4 + $0x60] sm:$0xff]  ;;  %v418_v42 = vpack.c.bf16 %v217_v40, %v216_v39  ;;  %v201_v43 = vld [vmem:[%s665_s4 + $0x68] sm:$0xff]  ;;  %v218_v44 = vld [vmem:[%s665_s4 + $0xf0] sm:$0xff] }
  0x28   :  { %v152_v48 = vsel %vm109_vm0, %v148_v45, 0.0  ;;  %411 = vmatprep.subr.bf16.mxu0 %v410_v22  ;;  %v219_v45 = vld [vmem:[%s665_s4 + $0xf8] sm:$0xff] }
  0x29   :  { %113 = vadd.xlane.f32.xlu0 %v112_v47  ;;  %v153_v49 = vadd.f32 %v152_v48, %v151_v46  ;;  %v420_v46 = vpack.c.bf16 %v201_v43, %v200_v41  ;;  %v422_v47 = vpack.c.bf16 %v219_v45, %v218_v44  ;;  %v202_v48 = vld [vmem:[%s665_s4 + $0x70] sm:$0xff] }
  0x2b   :  { %413 = vmatpush3.bf16.msra.mxu0 %v412_v25 }
  0x2c   :  { %415 = vmatprep.subr.bf16.mxu0 %v414_v34 }
  0x2d   :  { %154 = vadd.xlane.f32.xlu0 %v153_v49  ;;  %v203_v49 = vld [vmem:[%s665_s4 + $0x78] sm:$0xff] }
  0x2e   :  { %v424_v50 = vpack.c.bf16 %v203_v49, %v202_v48 }
  0x2f   :  { %417 = vmatpush3.bf16.msra.mxu0 %v416_v37 }
  0x30   :  { %419 = vmatprep.subr.bf16.mxu0 %v418_v42 }
  0x33   :  { %421 = vmatpush3.bf16.msra.mxu0 %v420_v46 }
  0x34   :  { %423 = vmatprep.subr.bf16.mxu0 %v422_v47 }
  0x37   :  { %425 = vmatpush3.bf16.msra.mxu0 %v424_v50 }
  0xb6   :  { %v114_v4 = vpop.xlane.xlu0 %113 }
  0xb7   :  { %v115_v5 = vrot.slane %v114_v4, 4 }
  0xb9   :  { %v116_v6 = vadd.f32 %v115_v5, %v114_v4  ;;  %v358_v5 = vld [vmem:[%s667_s6] ss:$0 sm:$0xff] }
  0xba   :  { %v155_v7 = vpop.xlane.xlu0 %154 }
  0xbb   :  { %v117_v10 = vrot.slane %v116_v6, 2  ;;  %v156_v11 = vrot.slane %v155_v7, 4 }
  0xbd   :  { %v157_v16 = vadd.f32 %v156_v11, %v155_v7  ;;  %v118_v17 = vadd.f32 %v117_v10, %v116_v6 }
  0xbf   :  { %v158_v20 = vrot.slane %v157_v16, 2  ;;  %v119_v21 = vrot.slane %v118_v17, 1 }
  0xc1   :  { %v159_v26 = vadd.f32 %v158_v20, %v157_v16  ;;  %v120_v27 = vadd.f32 %v119_v21, %v118_v17 }
  0xc3   :  { %426 = vpush %v120_v27  ;;  %v160_v33 = vrot.slane %v159_v26, 1 }
  0xc5   :  { %v161_v38 = vadd.f32 %v160_v33, %v159_v26 }
  0xc7   :  { %428 = vpush %v161_v38 }
  0xf4   :  { %s427_s21 = spop %426 }
  0xf5   :  { %s165_s22 = smul.f32 0.001953125, %s427_s21 }
  0xf7   :  { %s169_s23 = smul.f32 %s165_s22, %s165_s22 }
  0xf8   :  { %s429_s24 = spop %428 }
  0xf9   :  { %s168_s25 = smul.f32 0.001953125, %s429_s24 }
  0xfb   :  { %s170_s26 = ssub.f32 %s168_s25, %s169_s23 }
  0xfd   :  { %s172_s27 = sadd.f32 1e-05, %s170_s26 }
  0xff   :  { %v173_v51 = vstv %s172_s27 }
 0x100   :  { %434 = vrsqrt.f32 %v173_v51 }
 0x10a   :  { %v435_v52 = vpop.eup %434 }
 0x10b   :  { %430 = vpush %v435_v52 }
 0x13c   :  { %s431_s28 = spop %430 }
 0x13d   :  { %s176_s4 = smul.f32 %s431_s28, %s663_s2 }
 0x13f   :  { %s178_s30 = smul.f32 %s176_s4, %s165_s22  ;;  %v180_v53 = vstv %s176_s4 }
 0x140   :  { %v181_v54 = vmul.f32 %v180_v53, %v524_v29  ;;  %v182_v55 = vmul.f32 %v180_v53, %v526_v30  ;;  %v357_v29 = vld [vmem:[%s666_s5] ss:$0 sm:$0xff] }
 0x141   :  { %s179_s11 = ssub.f32 %s664_s3, %s178_s30 }
 0x143   :  { %v183_v56 = vstv %s179_s11 }
 0x144   :  { %v184_v57 = vadd.f32 %v183_v56, %v181_v54  ;;  %v185_v58 = vadd.f32 %v183_v56, %v182_v55 }
 0x146   :  { %v186_v59 = vmax.f32 %v184_v57, 0.0  ;;  %v187_v60 = vmax.f32 %v185_v58, 0.0 }
 0x148   :  { %v229_v61 = vcombine.low %v186_v59, %v187_v60 }
 0x14a   :  { %v236_v62 = vrot.slane %v229_v61, %v528_v31 }
 0x14c   :  { %v237_v63 = vcombine.high %v236_v62, %v236_v62  ;;  %v244_v1 = vrot.slane %v236_v62, %v528_v31 }
 0x14e   :  { %v251_v0 = vrot.slane %v237_v63, %v528_v31  ;;  %v338_v31 = vstv %s668_s7 }
 0x150   :  { %318 = vmatprep.mubr.f32.mxu0 %v251_v0 }
 0x151   :  { %319 = vmatmul.mubr.f32.vlgmr.msra.gmra.mrb[0].mxu0 %v244_v1 }
 0x224   :  { %v391_v2 = vpop.f32.mrb[0].mxu0 }
 0x225   :  { %v392_v30 = vpop.f32.mrb[1].mxu0 }
 0x226   :  { %v393_v3 = vadd.f32 %v392_v30, %v391_v2 }
 0x228   :  { %v321_v4 = vadd.f32 %v393_v3, %v357_v29 }
 0x22a   :  { %v324_v6 = vmax.f32 %v321_v4, 0.0 }
 0x22c   :  { %v332_v7 = vmul.f32 %v358_v5, %v324_v6 }
 0x22e   :  { %v334_v8 = vsel %vm333_vm1, %v332_v7, 0.0 }
 0x22f   :  { %335 = vadd.xlane.f32.xlu1 %v334_v8 }
 0x2bc   :  { %v336_v9 = vpop.xlane.xlu1 %335 }
 0x2bd   :  { %v339_v10 = vadd.f32 %v338_v31, %v336_v9 }
 0x2bf   :  { %341 = vst.msk [vmem:[%s669_s8] sm:$0x3] %vm340_vm2, %v339_v10 }
 0x2c0   :  { %346 = vsyncpa [#allocation6], 1 }

</bundles_post_ra>
